<compile_context>
chip_gen: v7x
topology: tpu7x:2x2x1
jax: 0.10.0
libtpu: 0.0.40
codegen_flags: <defaults>
</compile_context>

<pallas_src>
import functools

import jax
import jax.numpy as jnp
from jax.experimental import pallas as pl
from jax.experimental.pallas import tpu as pltpu

_HALO = 128  # lane-aligned causal halo; must cover 2*(K-1)*sum(dilation) (=36 here)


def _silu(x):
    return x * jax.nn.sigmoid(x)


# ----------------------------------------------------------------------------
# Fused kernel for one (batch, T-tile) grid point:
#   widened block = [128-col halo | T_TILE central]  ->
#   (optional temb bias) + 3x (silu -> conv1 -> silu -> conv2 -> residual),
#   store only the central T_TILE columns.
# ----------------------------------------------------------------------------
def _resblock1_kernel(xh_ref, xc_ref, w1_ref, b1_ref, w2_ref, b2_ref, *rest,
                      dilations, ksize, compute_dtype, has_temb):
    if has_temb:
        proj_ref, o_ref = rest
    else:
        (o_ref,) = rest

    halo = xh_ref.shape[-1]
    t_tile = xc_ref.shape[-1]
    C = xc_ref.shape[-2]
    W = halo + t_tile

    # Widened activation block, residual carried in f32.
    x = jnp.concatenate([xh_ref[0], xc_ref[0]], axis=1).astype(jnp.float32)  # (C, W)

    if has_temb:
        x = x + proj_ref[0].astype(jnp.float32)          # (C, 1) bias, broadcast over W

    # Causal-boundary mask: on the FIRST T-tile the halo columns of every conv
    # input must be exact zeros (the reference zero-pads each conv input).
    # Interior tiles carry real left context in the halo -> mask is all-ones.
    col = jax.lax.broadcasted_iota(jnp.int32, (1, W), 1)
    keep = jnp.logical_or(pl.program_id(1) > 0, col >= halo)
    mask = keep.astype(compute_dtype)                    # (1, W) multiplicative mask

    def causal_conv(inp_f32, w, b, d):
        # Cast to compute dtype BEFORE shifting/masking (halves shift & select
        # traffic), build the K causally shifted taps from one left zero-pad
        # plus static lane slices, stack on the sublane axis and run ONE MXU
        # dot with contraction K*C (f32 accumulation).
        inp = inp_f32.astype(compute_dtype) * mask                        # (C, W)
        maxs = (ksize - 1) * d
        padded = jnp.concatenate(
            [jnp.zeros((C, maxs), compute_dtype), inp], axis=1)           # (C, W+maxs)
        taps = [padded[:, k * d: k * d + W] for k in range(ksize)]        # shift (K-1-k)*d
        stacked = jnp.concatenate(taps, axis=0)                           # (K*C, W)
        out = jnp.dot(w, stacked, preferred_element_type=jnp.float32)     # (C, W) f32
        return out + b.astype(jnp.float32)                                # bias (C, 1)

    for i, d in enumerate(dilations):                    # static unroll, 3 branches
        xt = causal_conv(_silu(x), w1_ref[i], b1_ref[i], d)
        xt = causal_conv(_silu(xt), w2_ref[i], b2_ref[i], d)
        x = xt + x

    o_ref[0] = x[:, halo:].astype(o_ref.dtype)           # store central columns only


def resblock1_forward(params, x, temb=None, *, kernel_size=3, dilation=(1, 3, 5),
                      compute_dtype=jnp.bfloat16, t_tile=1024):
    """Fused ResBlock1 forward. x: (B, C, T); temb: (B, E) or None."""
    B, C, T = x.shape
    n = len(dilation)
    K = kernel_size

    if 2 * (K - 1) * sum(dilation) > _HALO:
        raise ValueError("Receptive field exceeds the causal halo; enlarge _HALO.")

    # Lane-aligned T tiling: central tile width (multiple of 128), padded T.
    t_tile = max(_HALO, min((t_tile // _HALO) * _HALO, pl.cdiv(T, _HALO) * _HALO))
    T_pad = pl.cdiv(T, t_tile) * t_tile
    x_in = jnp.pad(x, ((0, 0), (0, 0), (0, T_pad - T))) if T_pad != T else x
    num_t = T_pad // t_tile
    ratio = t_tile // _HALO

    # Fold the K taps of each conv into one (C_out, K*C_in) slab so the kernel
    # does a single wide-contraction dot against the stacked shifted taps.
    def stack_w(entries):
        return jnp.stack([jnp.transpose(e["w"], (0, 2, 1)).reshape(C, K * C)
                          for e in entries]).astype(compute_dtype)        # (n, C, K*C)

    def stack_b(entries):
        return jnp.stack([e["b"] for e in entries]).astype(jnp.float32)   # (n, C, 1)

    w1s, b1s = stack_w(params["convs1"]), stack_b(params["convs1"])
    w2s, b2s = stack_w(params["convs2"]), stack_b(params["convs2"])

    has_temb = temb is not None and "proj_w" in params

    in_arrays = [x_in, x_in, w1s, b1s, w2s, b2s]
    # TODO(synk): single-buffer the grid-invariant weight specs with
    # pipeline_mode=pl.Buffered(1) once safe on all deployed jax versions;
    # their index_map is constant so they are only DMA'd once either way.
    in_specs = [
        # 128-column causal halo directly preceding the current tile.
        pl.BlockSpec((1, C, _HALO),
                     lambda b, j: (b, 0, jnp.maximum(j * ratio - 1, 0))),
        # Current T tile.
        pl.BlockSpec((1, C, t_tile), lambda b, j: (b, 0, j)),
        pl.BlockSpec((n, C, K * C), lambda b, j: (0, 0, 0)),
        pl.BlockSpec((n, C, 1), lambda b, j: (0, 0, 0)),
        pl.BlockSpec((n, C, K * C), lambda b, j: (0, 0, 0)),
        pl.BlockSpec((n, C, 1), lambda b, j: (0, 0, 0)),
    ]
    if has_temb:
        # temb projection hoisted to XLA (tiny (B,E)@(E,C)); kernel adds a (C,1) bias.
        proj = (_silu(temb.astype(jnp.float32)) @ params["proj_w"].T.astype(jnp.float32)
                + params["proj_b"].reshape(1, -1))
        in_arrays.append(proj[:, :, None])                                # (B, C, 1)
        in_specs.append(pl.BlockSpec((1, C, 1), lambda b, j: (b, 0, 0)))

    kern = functools.partial(_resblock1_kernel, dilations=tuple(dilation), ksize=K,
                             compute_dtype=compute_dtype, has_temb=has_temb)

    # VMEM budget: resident weights + double-buffered I/O tiles + in-kernel
    # temporaries, clamped to [32 MiB, 64 MiB] (64 MiB = v7x physical VMEM).
    cd = jnp.dtype(compute_dtype).itemsize
    xb = jnp.dtype(x.dtype).itemsize
    W_cols = _HALO + t_tile
    weight_bytes = 2 * n * (C * K * C * cd + C * 4)
    act_bytes = 2 * (C * (t_tile + _HALO) + C * t_tile) * xb + 10 * C * W_cols * 4
    vmem_limit = int(min(max(2 * weight_bytes + act_bytes, 32 * 1024 * 1024),
                         64 * 1024 * 1024))

    cost = pl.CostEstimate(
        flops=int(2 * 2 * n * K * C * C * B * T_pad),        # 36*B*C^2*T for K=3, n=3
        transcendentals=int(2 * n * B * C * T_pad),          # one exp per silu
        bytes_accessed=int(2 * B * C * T_pad * xb + weight_bytes))

    out = pl.pallas_call(
        kern,
        out_shape=jax.ShapeDtypeStruct((B, C, T_pad), x.dtype),
        grid=(B, num_t),
        in_specs=in_specs,
        out_specs=pl.BlockSpec((1, C, t_tile), lambda b, j: (b, 0, j)),
        compiler_params=pltpu.CompilerParams(
            dimension_semantics=("parallel", "parallel"),
            vmem_limit_bytes=vmem_limit),
        cost_estimate=cost,
    )(*in_arrays)
    # TODO(synk): wire input_output_aliases once callers donate x (and accept
    # bf16 activations) to remove the extra HBM output allocation.
    return out[:, :, :T] if T_pad != T else out


# ----------------------------------------------------------------------------
# Parameter setup (plain JAX glue): weight_norm(dim=0) folding, deterministic init.
# ----------------------------------------------------------------------------
def weight_norm_fold(v, g):
    # v: (C_out, C_in, K), g: (C_out,)  ->  w = g * v / ||v||_(dims 1,2)
    norm = jnp.sqrt(jnp.sum(v * v, axis=(1, 2), keepdims=True))
    return g[:, None, None] * v / norm


def init_resblock1_params(key, channels, kernel_size, dilation, time_embedding_dim):
    n_conv = len(dilation)
    params = {"convs1": [], "convs2": []}
    for _ in range(n_conv):
        for name in ("convs1", "convs2"):
            key, kv, kg, kb = jax.random.split(key, 4)
            v = 0.01 * jax.random.normal(kv, (channels, channels, kernel_size), jnp.float32)
            g = 0.5 + jax.random.uniform(kg, (channels,), jnp.float32)
            b = 0.01 * jax.random.normal(kb, (channels, 1), jnp.float32)
            params[name].append({"w": weight_norm_fold(v, g), "b": b})
    if time_embedding_dim is not None:
        key, kw, kb = jax.random.split(key, 3)
        params["proj_w"] = 0.1 * jax.random.normal(
            kw, (channels, time_embedding_dim), jnp.float32)
        params["proj_b"] = 0.1 * jax.random.normal(kb, (channels, 1), jnp.float32)
    return params


# ----------------------------------------------------------------------------
# Pure-JAX reference (independent implementation via lax.conv_general_dilated).
# ----------------------------------------------------------------------------
def _ref_causal_conv(x, w, b, dilation):
    pad = (w.shape[-1] - 1) * dilation
    out = jax.lax.conv_general_dilated(
        x, w, window_strides=(1,), padding=[(pad, 0)],
        rhs_dilation=(dilation,), dimension_numbers=("NCH", "OIH", "NCH"),
        precision=jax.lax.Precision.HIGHEST)
    return out + b.reshape(1, -1, 1)


def resblock1_reference(params, x, temb=None, *, kernel_size=3, dilation=(1, 3, 5)):
    if temb is not None and "proj_w" in params:
        proj = _silu(temb) @ params["proj_w"].T + params["proj_b"].reshape(1, -1)
        x = x + proj[:, :, None]
    for i, d in enumerate(dilation):
        c1 = params["convs1"][i]
        c2 = params["convs2"][i]
        xt = _silu(x)
        xt = _ref_causal_conv(xt, c1["w"], c1["b"], d)
        xt = _silu(xt)
        xt = _ref_causal_conv(xt, c2["w"], c2["b"], d)
        x = xt + x
    return x


if __name__ == "__main__":
    B, C, T = 2, 4, 16
    E = 8
    kernel_size = 3
    dilation = (1, 3, 5)

    key = jax.random.PRNGKey(0)
    key, kx, kt, kp = jax.random.split(key, 4)
    x = jax.random.normal(kx, (B, C, T), jnp.float32)
    temb = jax.random.normal(kt, (B, E), jnp.float32)
    params = init_resblock1_params(kp, C, kernel_size, dilation, E)

    ref = jax.block_until_ready(
        resblock1_reference(params, x, temb, kernel_size=kernel_size, dilation=dilation))

    # f32 MXU-operand path -- tight check.
    out_f32 = jax.block_until_ready(
        resblock1_forward(params, x, temb, kernel_size=kernel_size,
                          dilation=dilation, compute_dtype=jnp.float32))
    assert out_f32.shape == (B, C, T)
    assert jnp.allclose(out_f32, ref, rtol=1e-3, atol=1e-3), \
        f"f32 path max abs err {jnp.max(jnp.abs(out_f32 - ref))}"

    # Default fast path (bf16 MXU operands, f32 accumulate) -- loose check.
    out_bf16 = jax.block_until_ready(
        resblock1_forward(params, x, temb, kernel_size=kernel_size, dilation=dilation))
    assert out_bf16.shape == (B, C, T)
    assert jnp.allclose(out_bf16, ref, rtol=5e-2, atol=5e-2), \
        f"bf16 path max abs err {jnp.max(jnp.abs(out_bf16 - ref))}"

    # No-temb path.
    out_nt = jax.block_until_ready(
        resblock1_forward(params, x, None, kernel_size=kernel_size,
                          dilation=dilation, compute_dtype=jnp.float32))
    ref_nt = resblock1_reference(params, x, None, kernel_size=kernel_size,
                                 dilation=dilation)
    assert jnp.allclose(out_nt, ref_nt, rtol=1e-3, atol=1e-3), \
        f"no-temb path max abs err {jnp.max(jnp.abs(out_nt - ref_nt))}"

    # Multi-tile T path (exercises the causal halo across T-tiles): 3 tiles of 128.
    T2 = 300
    key, kx2 = jax.random.split(key)
    x2 = jax.random.normal(kx2, (B, C, T2), jnp.float32)
    ref2 = resblock1_reference(params, x2, temb, kernel_size=kernel_size, dilation=dilation)
    out2 = jax.block_until_ready(
        resblock1_forward(params, x2, temb, kernel_size=kernel_size, dilation=dilation,
                          compute_dtype=jnp.float32, t_tile=128))
    assert out2.shape == (B, C, T2)
    assert jnp.allclose(out2, ref2, rtol=1e-3, atol=1e-3), \
        f"multi-tile path max abs err {jnp.max(jnp.abs(out2 - ref2))}"

    print("KERNEL_OK")
</pallas_src>

<mosaic_0001>
module attributes {stable_mosaic.version = 11 : i64} {
  func.func @_resblock1_kernel(%arg0: i32, %arg1: i32, %arg2: memref<1x4x128xf32, #tpu.memory_space<vmem>>, %arg3: memref<1x4x128xf32, #tpu.memory_space<vmem>>, %arg4: memref<3x4x12xf32, #tpu.memory_space<vmem>>, %arg5: memref<3x4x1xf32, #tpu.memory_space<vmem>>, %arg6: memref<3x4x12xf32, #tpu.memory_space<vmem>>, %arg7: memref<3x4x1xf32, #tpu.memory_space<vmem>>, %arg8: memref<1x4x1xf32, #tpu.memory_space<vmem>>, %arg9: memref<1x4x128xf32, #tpu.memory_space<vmem>>) attributes {dimension_semantics = [#tpu.dimension_semantics<parallel>, #tpu.dimension_semantics<parallel>], iteration_bounds = array<i64: 2, 1>, scalar_prefetch = 0 : i64, scratch_operands = 0 : i64, tpu.core_type = #tpu.core_type<tc>, window_params = [{transform_indices = @transform_0, window_bounds = array<i64: 1, 4, 128>}, {transform_indices = @transform_1, window_bounds = array<i64: 1, 4, 128>}, {pipeline_mode = #tpu.pipeline_mode<synchronous>, transform_indices = @transform_2, window_bounds = array<i64: 3, 4, 12>}, {pipeline_mode = #tpu.pipeline_mode<synchronous>, transform_indices = @transform_3, window_bounds = array<i64: 3, 4, 1>}, {pipeline_mode = #tpu.pipeline_mode<synchronous>, transform_indices = @transform_4, window_bounds = array<i64: 3, 4, 12>}, {pipeline_mode = #tpu.pipeline_mode<synchronous>, transform_indices = @transform_5, window_bounds = array<i64: 3, 4, 1>}, {transform_indices = @transform_6, window_bounds = array<i64: 1, 4, 1>}, {transform_indices = @transform_7, window_bounds = array<i64: 1, 4, 128>}]} {
    %c0 = arith.constant 0 : index
    %c0_0 = arith.constant 0 : index
    %c0_1 = arith.constant 0 : index
    %0 = vector.load %arg2[%c0, %c0_0, %c0_1] : memref<1x4x128xf32, #tpu.memory_space<vmem>>, vector<1x4x128xf32>
    %1 = vector.shape_cast %0 : vector<1x4x128xf32> to vector<4x128xf32>
    %c0_2 = arith.constant 0 : index
    %c0_3 = arith.constant 0 : index
    %c0_4 = arith.constant 0 : index
    %2 = vector.load %arg3[%c0_2, %c0_3, %c0_4] : memref<1x4x128xf32, #tpu.memory_space<vmem>>, vector<1x4x128xf32>
    %3 = vector.shape_cast %2 : vector<1x4x128xf32> to vector<4x128xf32>
    %4 = tpu.concatenate %1, %3 in 1 : vector<4x128xf32>, vector<4x128xf32> -> vector<4x256xf32>
    %c0_5 = arith.constant 0 : index
    %c0_6 = arith.constant 0 : index
    %c0_7 = arith.constant 0 : index
    %5 = vector.load %arg8[%c0_5, %c0_6, %c0_7] : memref<1x4x1xf32, #tpu.memory_space<vmem>>, vector<1x4x1xf32>
    %6 = vector.shape_cast %5 : vector<1x4x1xf32> to vector<4x1xf32>
    %7 = vector.broadcast %6 : vector<4x1xf32> to vector<4x256xf32>
    %8 = arith.addf %4, %7 : vector<4x256xf32>
    %9 = tpu.iota {dimensions = array<i32: 1>} : vector<1x256xi32>
    %c0_i32 = arith.constant 0 : i32
    %10 = arith.cmpi sgt, %arg1, %c0_i32 : i32
    %c128_i32 = arith.constant 128 : i32
    %11 = vector.broadcast %c128_i32 : i32 to vector<1x256xi32>
    %12 = arith.cmpi sge, %9, %11 : vector<1x256xi32>
    %13 = vector.broadcast %10 : i1 to vector<1x256xi1>
    %14 = arith.ori %13, %12 : vector<1x256xi1>
    %15 = arith.extui %14 : vector<1x256xi1> to vector<1x256xi32>
    %16 = arith.sitofp %15 : vector<1x256xi32> to vector<1x256xf32>
    %17 = arith.negf %8 : vector<4x256xf32>
    %18 = math.exp %17 : vector<4x256xf32>
    %cst = arith.constant 1.000000e+00 : f32
    %19 = vector.broadcast %cst : f32 to vector<4x256xf32>
    %20 = arith.addf %19, %18 : vector<4x256xf32>
    %21 = arith.divf %19, %20 : vector<4x256xf32>
    %22 = arith.mulf %8, %21 : vector<4x256xf32>
    %c0_8 = arith.constant 0 : index
    %c0_9 = arith.constant 0 : index
    %c0_10 = arith.constant 0 : index
    %23 = vector.load %arg4[%c0_8, %c0_9, %c0_10] : memref<3x4x12xf32, #tpu.memory_space<vmem>>, vector<1x4x12xf32>
    %24 = vector.shape_cast %23 : vector<1x4x12xf32> to vector<4x12xf32>
    %c0_11 = arith.constant 0 : index
    %c0_12 = arith.constant 0 : index
    %c0_13 = arith.constant 0 : index
    %25 = vector.load %arg5[%c0_11, %c0_12, %c0_13] : memref<3x4x1xf32, #tpu.memory_space<vmem>>, vector<1x4x1xf32>
    %26 = vector.shape_cast %25 : vector<1x4x1xf32> to vector<4x1xf32>
    %27 = vector.broadcast %16 : vector<1x256xf32> to vector<4x256xf32>
    %28 = arith.mulf %22, %27 : vector<4x256xf32>
    %cst_14 = arith.constant 0.000000e+00 : f32
    %29 = vector.broadcast %cst_14 : f32 to vector<4x2xf32>
    %30 = tpu.concatenate %29, %28 in 1 : vector<4x2xf32>, vector<4x256xf32> -> vector<4x258xf32>
    %31 = vector.extract_strided_slice %30 {offsets = [0, 0], sizes = [4, 256], strides = [1, 1]} : vector<4x258xf32> to vector<4x256xf32>
    %32 = vector.extract_strided_slice %30 {offsets = [0, 1], sizes = [4, 256], strides = [1, 1]} : vector<4x258xf32> to vector<4x256xf32>
    %33 = vector.extract_strided_slice %30 {offsets = [0, 2], sizes = [4, 256], strides = [1, 1]} : vector<4x258xf32> to vector<4x256xf32>
    %34 = tpu.concatenate %31, %32, %33 in 0 : vector<4x256xf32>, vector<4x256xf32>, vector<4x256xf32> -> vector<12x256xf32>
    %cst_15 = arith.constant dense<0.000000e+00> : vector<4x256xf32>
    %35 = tpu.matmul %24, %34, %cst_15 {dimension_numbers = #tpu.dot_dimension_numbers<[1], [0], [0], [1], [0, 0, 1, 1], [], []>} : vector<4x12xf32>, vector<12x256xf32>, vector<4x256xf32> -> vector<4x256xf32>
    %36 = vector.broadcast %26 : vector<4x1xf32> to vector<4x256xf32>
    %37 = arith.addf %35, %36 : vector<4x256xf32>
    %38 = arith.negf %37 : vector<4x256xf32>
    %39 = math.exp %38 : vector<4x256xf32>
    %cst_16 = arith.constant 1.000000e+00 : f32
    %40 = vector.broadcast %cst_16 : f32 to vector<4x256xf32>
    %41 = arith.addf %40, %39 : vector<4x256xf32>
    %42 = arith.divf %40, %41 : vector<4x256xf32>
    %43 = arith.mulf %37, %42 : vector<4x256xf32>
    %c0_17 = arith.constant 0 : index
    %c0_18 = arith.constant 0 : index
    %c0_19 = arith.constant 0 : index
    %44 = vector.load %arg6[%c0_17, %c0_18, %c0_19] : memref<3x4x12xf32, #tpu.memory_space<vmem>>, vector<1x4x12xf32>
    %45 = vector.shape_cast %44 : vector<1x4x12xf32> to vector<4x12xf32>
    %c0_20 = arith.constant 0 : index
    %c0_21 = arith.constant 0 : index
    %c0_22 = arith.constant 0 : index
    %46 = vector.load %arg7[%c0_20, %c0_21, %c0_22] : memref<3x4x1xf32, #tpu.memory_space<vmem>>, vector<1x4x1xf32>
    %47 = vector.shape_cast %46 : vector<1x4x1xf32> to vector<4x1xf32>
    %48 = vector.broadcast %16 : vector<1x256xf32> to vector<4x256xf32>
    %49 = arith.mulf %43, %48 : vector<4x256xf32>
    %cst_23 = arith.constant 0.000000e+00 : f32
    %50 = vector.broadcast %cst_23 : f32 to vector<4x2xf32>
    %51 = tpu.concatenate %50, %49 in 1 : vector<4x2xf32>, vector<4x256xf32> -> vector<4x258xf32>
    %52 = vector.extract_strided_slice %51 {offsets = [0, 0], sizes = [4, 256], strides = [1, 1]} : vector<4x258xf32> to vector<4x256xf32>
    %53 = vector.extract_strided_slice %51 {offsets = [0, 1], sizes = [4, 256], strides = [1, 1]} : vector<4x258xf32> to vector<4x256xf32>
    %54 = vector.extract_strided_slice %51 {offsets = [0, 2], sizes = [4, 256], strides = [1, 1]} : vector<4x258xf32> to vector<4x256xf32>
    %55 = tpu.concatenate %52, %53, %54 in 0 : vector<4x256xf32>, vector<4x256xf32>, vector<4x256xf32> -> vector<12x256xf32>
    %cst_24 = arith.constant dense<0.000000e+00> : vector<4x256xf32>
    %56 = tpu.matmul %45, %55, %cst_24 {dimension_numbers = #tpu.dot_dimension_numbers<[1], [0], [0], [1], [0, 0, 1, 1], [], []>} : vector<4x12xf32>, vector<12x256xf32>, vector<4x256xf32> -> vector<4x256xf32>
    %57 = vector.broadcast %47 : vector<4x1xf32> to vector<4x256xf32>
    %58 = arith.addf %56, %57 : vector<4x256xf32>
    %59 = arith.addf %58, %8 : vector<4x256xf32>
    %60 = arith.negf %59 : vector<4x256xf32>
    %61 = math.exp %60 : vector<4x256xf32>
    %cst_25 = arith.constant 1.000000e+00 : f32
    %62 = vector.broadcast %cst_25 : f32 to vector<4x256xf32>
    %63 = arith.addf %62, %61 : vector<4x256xf32>
    %64 = arith.divf %62, %63 : vector<4x256xf32>
    %65 = arith.mulf %59, %64 : vector<4x256xf32>
    %c1 = arith.constant 1 : index
    %c0_26 = arith.constant 0 : index
    %c0_27 = arith.constant 0 : index
    %66 = vector.load %arg4[%c1, %c0_26, %c0_27] : memref<3x4x12xf32, #tpu.memory_space<vmem>>, vector<1x4x12xf32>
    %67 = vector.shape_cast %66 : vector<1x4x12xf32> to vector<4x12xf32>
    %c1_28 = arith.constant 1 : index
    %c0_29 = arith.constant 0 : index
    %c0_30 = arith.constant 0 : index
    %68 = vector.load %arg5[%c1_28, %c0_29, %c0_30] : memref<3x4x1xf32, #tpu.memory_space<vmem>>, vector<1x4x1xf32>
    %69 = vector.shape_cast %68 : vector<1x4x1xf32> to vector<4x1xf32>
    %70 = vector.broadcast %16 : vector<1x256xf32> to vector<4x256xf32>
    %71 = arith.mulf %65, %70 : vector<4x256xf32>
    %cst_31 = arith.constant 0.000000e+00 : f32
    %72 = vector.broadcast %cst_31 : f32 to vector<4x6xf32>
    %73 = tpu.concatenate %72, %71 in 1 : vector<4x6xf32>, vector<4x256xf32> -> vector<4x262xf32>
    %74 = vector.extract_strided_slice %73 {offsets = [0, 0], sizes = [4, 256], strides = [1, 1]} : vector<4x262xf32> to vector<4x256xf32>
    %75 = vector.extract_strided_slice %73 {offsets = [0, 3], sizes = [4, 256], strides = [1, 1]} : vector<4x262xf32> to vector<4x256xf32>
    %76 = vector.extract_strided_slice %73 {offsets = [0, 6], sizes = [4, 256], strides = [1, 1]} : vector<4x262xf32> to vector<4x256xf32>
    %77 = tpu.concatenate %74, %75, %76 in 0 : vector<4x256xf32>, vector<4x256xf32>, vector<4x256xf32> -> vector<12x256xf32>
    %cst_32 = arith.constant dense<0.000000e+00> : vector<4x256xf32>
    %78 = tpu.matmul %67, %77, %cst_32 {dimension_numbers = #tpu.dot_dimension_numbers<[1], [0], [0], [1], [0, 0, 1, 1], [], []>} : vector<4x12xf32>, vector<12x256xf32>, vector<4x256xf32> -> vector<4x256xf32>
    %79 = vector.broadcast %69 : vector<4x1xf32> to vector<4x256xf32>
    %80 = arith.addf %78, %79 : vector<4x256xf32>
    %81 = arith.negf %80 : vector<4x256xf32>
    %82 = math.exp %81 : vector<4x256xf32>
    %cst_33 = arith.constant 1.000000e+00 : f32
    %83 = vector.broadcast %cst_33 : f32 to vector<4x256xf32>
    %84 = arith.addf %83, %82 : vector<4x256xf32>
    %85 = arith.divf %83, %84 : vector<4x256xf32>
    %86 = arith.mulf %80, %85 : vector<4x256xf32>
    %c1_34 = arith.constant 1 : index
    %c0_35 = arith.constant 0 : index
    %c0_36 = arith.constant 0 : index
    %87 = vector.load %arg6[%c1_34, %c0_35, %c0_36] : memref<3x4x12xf32, #tpu.memory_space<vmem>>, vector<1x4x12xf32>
    %88 = vector.shape_cast %87 : vector<1x4x12xf32> to vector<4x12xf32>
    %c1_37 = arith.constant 1 : index
    %c0_38 = arith.constant 0 : index
    %c0_39 = arith.constant 0 : index
    %89 = vector.load %arg7[%c1_37, %c0_38, %c0_39] : memref<3x4x1xf32, #tpu.memory_space<vmem>>, vector<1x4x1xf32>
    %90 = vector.shape_cast %89 : vector<1x4x1xf32> to vector<4x1xf32>
    %91 = vector.broadcast %16 : vector<1x256xf32> to vector<4x256xf32>
    %92 = arith.mulf %86, %91 : vector<4x256xf32>
    %cst_40 = arith.constant 0.000000e+00 : f32
    %93 = vector.broadcast %cst_40 : f32 to vector<4x6xf32>
    %94 = tpu.concatenate %93, %92 in 1 : vector<4x6xf32>, vector<4x256xf32> -> vector<4x262xf32>
    %95 = vector.extract_strided_slice %94 {offsets = [0, 0], sizes = [4, 256], strides = [1, 1]} : vector<4x262xf32> to vector<4x256xf32>
    %96 = vector.extract_strided_slice %94 {offsets = [0, 3], sizes = [4, 256], strides = [1, 1]} : vector<4x262xf32> to vector<4x256xf32>
    %97 = vector.extract_strided_slice %94 {offsets = [0, 6], sizes = [4, 256], strides = [1, 1]} : vector<4x262xf32> to vector<4x256xf32>
    %98 = tpu.concatenate %95, %96, %97 in 0 : vector<4x256xf32>, vector<4x256xf32>, vector<4x256xf32> -> vector<12x256xf32>
    %cst_41 = arith.constant dense<0.000000e+00> : vector<4x256xf32>
    %99 = tpu.matmul %88, %98, %cst_41 {dimension_numbers = #tpu.dot_dimension_numbers<[1], [0], [0], [1], [0, 0, 1, 1], [], []>} : vector<4x12xf32>, vector<12x256xf32>, vector<4x256xf32> -> vector<4x256xf32>
    %100 = vector.broadcast %90 : vector<4x1xf32> to vector<4x256xf32>
    %101 = arith.addf %99, %100 : vector<4x256xf32>
    %102 = arith.addf %101, %59 : vector<4x256xf32>
    %103 = arith.negf %102 : vector<4x256xf32>
    %104 = math.exp %103 : vector<4x256xf32>
    %cst_42 = arith.constant 1.000000e+00 : f32
    %105 = vector.broadcast %cst_42 : f32 to vector<4x256xf32>
    %106 = arith.addf %105, %104 : vector<4x256xf32>
    %107 = arith.divf %105, %106 : vector<4x256xf32>
    %108 = arith.mulf %102, %107 : vector<4x256xf32>
    %c2 = arith.constant 2 : index
    %c0_43 = arith.constant 0 : index
    %c0_44 = arith.constant 0 : index
    %109 = vector.load %arg4[%c2, %c0_43, %c0_44] : memref<3x4x12xf32, #tpu.memory_space<vmem>>, vector<1x4x12xf32>
    %110 = vector.shape_cast %109 : vector<1x4x12xf32> to vector<4x12xf32>
    %c2_45 = arith.constant 2 : index
    %c0_46 = arith.constant 0 : index
    %c0_47 = arith.constant 0 : index
    %111 = vector.load %arg5[%c2_45, %c0_46, %c0_47] : memref<3x4x1xf32, #tpu.memory_space<vmem>>, vector<1x4x1xf32>
    %112 = vector.shape_cast %111 : vector<1x4x1xf32> to vector<4x1xf32>
    %113 = vector.broadcast %16 : vector<1x256xf32> to vector<4x256xf32>
    %114 = arith.mulf %108, %113 : vector<4x256xf32>
    %cst_48 = arith.constant 0.000000e+00 : f32
    %115 = vector.broadcast %cst_48 : f32 to vector<4x10xf32>
    %116 = tpu.concatenate %115, %114 in 1 : vector<4x10xf32>, vector<4x256xf32> -> vector<4x266xf32>
    %117 = vector.extract_strided_slice %116 {offsets = [0, 0], sizes = [4, 256], strides = [1, 1]} : vector<4x266xf32> to vector<4x256xf32>
    %118 = vector.extract_strided_slice %116 {offsets = [0, 5], sizes = [4, 256], strides = [1, 1]} : vector<4x266xf32> to vector<4x256xf32>
    %119 = vector.extract_strided_slice %116 {offsets = [0, 10], sizes = [4, 256], strides = [1, 1]} : vector<4x266xf32> to vector<4x256xf32>
    %120 = tpu.concatenate %117, %118, %119 in 0 : vector<4x256xf32>, vector<4x256xf32>, vector<4x256xf32> -> vector<12x256xf32>
    %cst_49 = arith.constant dense<0.000000e+00> : vector<4x256xf32>
    %121 = tpu.matmul %110, %120, %cst_49 {dimension_numbers = #tpu.dot_dimension_numbers<[1], [0], [0], [1], [0, 0, 1, 1], [], []>} : vector<4x12xf32>, vector<12x256xf32>, vector<4x256xf32> -> vector<4x256xf32>
    %122 = vector.broadcast %112 : vector<4x1xf32> to vector<4x256xf32>
    %123 = arith.addf %121, %122 : vector<4x256xf32>
    %124 = arith.negf %123 : vector<4x256xf32>
    %125 = math.exp %124 : vector<4x256xf32>
    %cst_50 = arith.constant 1.000000e+00 : f32
    %126 = vector.broadcast %cst_50 : f32 to vector<4x256xf32>
    %127 = arith.addf %126, %125 : vector<4x256xf32>
    %128 = arith.divf %126, %127 : vector<4x256xf32>
    %129 = arith.mulf %123, %128 : vector<4x256xf32>
    %c2_51 = arith.constant 2 : index
    %c0_52 = arith.constant 0 : index
    %c0_53 = arith.constant 0 : index
    %130 = vector.load %arg6[%c2_51, %c0_52, %c0_53] : memref<3x4x12xf32, #tpu.memory_space<vmem>>, vector<1x4x12xf32>
    %131 = vector.shape_cast %130 : vector<1x4x12xf32> to vector<4x12xf32>
    %c2_54 = arith.constant 2 : index
    %c0_55 = arith.constant 0 : index
    %c0_56 = arith.constant 0 : index
    %132 = vector.load %arg7[%c2_54, %c0_55, %c0_56] : memref<3x4x1xf32, #tpu.memory_space<vmem>>, vector<1x4x1xf32>
    %133 = vector.shape_cast %132 : vector<1x4x1xf32> to vector<4x1xf32>
    %134 = vector.broadcast %16 : vector<1x256xf32> to vector<4x256xf32>
    %135 = arith.mulf %129, %134 : vector<4x256xf32>
    %cst_57 = arith.constant 0.000000e+00 : f32
    %136 = vector.broadcast %cst_57 : f32 to vector<4x10xf32>
    %137 = tpu.concatenate %136, %135 in 1 : vector<4x10xf32>, vector<4x256xf32> -> vector<4x266xf32>
    %138 = vector.extract_strided_slice %137 {offsets = [0, 0], sizes = [4, 256], strides = [1, 1]} : vector<4x266xf32> to vector<4x256xf32>
    %139 = vector.extract_strided_slice %137 {offsets = [0, 5], sizes = [4, 256], strides = [1, 1]} : vector<4x266xf32> to vector<4x256xf32>
    %140 = vector.extract_strided_slice %137 {offsets = [0, 10], sizes = [4, 256], strides = [1, 1]} : vector<4x266xf32> to vector<4x256xf32>
    %141 = tpu.concatenate %138, %139, %140 in 0 : vector<4x256xf32>, vector<4x256xf32>, vector<4x256xf32> -> vector<12x256xf32>
    %cst_58 = arith.constant dense<0.000000e+00> : vector<4x256xf32>
    %142 = tpu.matmul %131, %141, %cst_58 {dimension_numbers = #tpu.dot_dimension_numbers<[1], [0], [0], [1], [0, 0, 1, 1], [], []>} : vector<4x12xf32>, vector<12x256xf32>, vector<4x256xf32> -> vector<4x256xf32>
    %143 = vector.broadcast %133 : vector<4x1xf32> to vector<4x256xf32>
    %144 = arith.addf %142, %143 : vector<4x256xf32>
    %145 = arith.addf %144, %102 : vector<4x256xf32>
    %146 = vector.extract_strided_slice %145 {offsets = [0, 128], sizes = [4, 128], strides = [1, 1]} : vector<4x256xf32> to vector<4x128xf32>
    %c0_59 = arith.constant 0 : index
    %c0_60 = arith.constant 0 : index
    %c0_61 = arith.constant 0 : index
    %147 = vector.load %arg9[%c0_59, %c0_60, %c0_61] : memref<1x4x128xf32, #tpu.memory_space<vmem>>, vector<1x4x128xf32>
    %148 = vector.shape_cast %147 : vector<1x4x128xf32> to vector<4x128xf32>
    %149 = vector.shape_cast %146 : vector<4x128xf32> to vector<1x4x128xf32>
    tpu.vector_store %arg9[%c0_59, %c0_60, %c0_61], %149 {strides = array<i32>} : memref<1x4x128xf32, #tpu.memory_space<vmem>>, vector<1x4x128xf32>,
    return
  }
  func.func @transform_0(%arg0: i32, %arg1: i32) -> (i32, i32, i32) {
    %c1_i32 = arith.constant 1 : i32
    %0 = arith.muli %arg1, %c1_i32 : i32
    %c1_i32_0 = arith.constant 1 : i32
    %1 = arith.subi %0, %c1_i32_0 : i32
    %c0_i32 = arith.constant 0 : i32
    %2 = arith.maxsi %1, %c0_i32 : i32
    %c0_i32_1 = arith.constant 0 : i32
    %c0_i32_2 = arith.constant 0 : i32
    return %arg0, %c0_i32_1, %2 : i32, i32, i32
  }
  func.func @transform_1(%arg0: i32, %arg1: i32) -> (i32, i32, i32) {
    %c0_i32 = arith.constant 0 : i32
    %c0_i32_0 = arith.constant 0 : i32
    return %arg0, %c0_i32, %arg1 : i32, i32, i32
  }
  func.func @transform_2(%arg0: i32, %arg1: i32) -> (i32, i32, i32) {
    %c0_i32 = arith.constant 0 : i32
    %c0_i32_0 = arith.constant 0 : i32
    %c0_i32_1 = arith.constant 0 : i32
    %c0_i32_2 = arith.constant 0 : i32
    return %c0_i32, %c0_i32_0, %c0_i32_1 : i32, i32, i32
  }
  func.func @transform_3(%arg0: i32, %arg1: i32) -> (i32, i32, i32) {
    %c0_i32 = arith.constant 0 : i32
    %c0_i32_0 = arith.constant 0 : i32
    %c0_i32_1 = arith.constant 0 : i32
    %c0_i32_2 = arith.constant 0 : i32
    return %c0_i32, %c0_i32_0, %c0_i32_1 : i32, i32, i32
  }
  func.func @transform_4(%arg0: i32, %arg1: i32) -> (i32, i32, i32) {
    %c0_i32 = arith.constant 0 : i32
    %c0_i32_0 = arith.constant 0 : i32
    %c0_i32_1 = arith.constant 0 : i32
    %c0_i32_2 = arith.constant 0 : i32
    return %c0_i32, %c0_i32_0, %c0_i32_1 : i32, i32, i32
  }
  func.func @transform_5(%arg0: i32, %arg1: i32) -> (i32, i32, i32) {
    %c0_i32 = arith.constant 0 : i32
    %c0_i32_0 = arith.constant 0 : i32
    %c0_i32_1 = arith.constant 0 : i32
    %c0_i32_2 = arith.constant 0 : i32
    return %c0_i32, %c0_i32_0, %c0_i32_1 : i32, i32, i32
  }
  func.func @transform_6(%arg0: i32, %arg1: i32) -> (i32, i32, i32) {
    %c0_i32 = arith.constant 0 : i32
    %c0_i32_0 = arith.constant 0 : i32
    %c0_i32_1 = arith.constant 0 : i32
    return %arg0, %c0_i32, %c0_i32_0 : i32, i32, i32
  }
  func.func @transform_7(%arg0: i32, %arg1: i32) -> (i32, i32, i32) {
    %c0_i32 = arith.constant 0 : i32
    %c0_i32_0 = arith.constant 0 : i32
    return %arg0, %c0_i32, %arg1 : i32, i32, i32
  }
}

</mosaic_0001>

<bundles_post_ra>
// kernel: tpu_custom_call.1
= control target key start
LH: loop header
LB: loop body
LE: loop exit
PB: predicated region body
PF: predicated region fallthrough
CT: control target
= control target key end

     0   :  { %12 = vsyncpa [#allocation3], 0  ;;  %s2061_s0 = inlined_call_operand.vmem [shape: f32[2,4,128], index: 0, kind: input, shape index: {}]   ;;  %s2062_s1 = inlined_call_operand.vmem [shape: f32[2,4,128], index: 1, kind: input, shape index: {}]   ;;  %s2063_s2 = inlined_call_operand.vmem [shape: f32[3,4,12], index: 2, kind: input, shape index: {}]   ;;  %s2064_s3 = inlined_call_operand.vmem [shape: f32[3,4,1], index: 3, kind: input, shape index: {}]   ;;  %s2065_s4 = inlined_call_operand.vmem [shape: f32[3,4,12], index: 4, kind: input, shape index: {}]   ;;  %s2066_s5 = inlined_call_operand.vmem [shape: f32[3,4,1], index: 5, kind: input, shape index: {}]   ;;  %s2067_s6 = inlined_call_operand.vmem [shape: f32[2,4,1], index: 6, kind: input, shape index: {}]   ;;  %s2068_s7 = inlined_call_operand.hbm [shape: f32[2,4,128], index: 7, kind: output, shape index: {}]  }
   0x1   :  { %14 = vsyncpa [#allocation3 + $0x1], 0  ;;  %s1763_s24 = smov 0   ;;  %s1765_s25 = smov 0  }
   0x2   :  { %s1767_s26 = smov 0   ;;  %s1769_s27 = smov 0  }
   0x3   :  { %s1771_s28 = smov 0   ;;  %s1773_s29 = smov 0  }
   0x4 LB: > { %s1337_s30 = sadd.s32 4294967295, %s1708_s29   ;;  %s1338_s8 = sadd.s32 4294967294, %s1708_s29   ;;  %s1708_s29 = sphi %s1773_s29, %s20_s29   ;;  %s1704_s28 = sphi %s1771_s28, %s2077_s28   ;;  %s1700_s27 = sphi %s1769_s27, %s2076_s27   ;;  %s1696_s26 = sphi %s1767_s26, %s2075_s26   ;;  %s1692_s25 = sphi %s1765_s25, %s2074_s25   ;;  %s1688_s24 = sphi %s1763_s24, %s2073_s24  }
   0x5   : > { %s32_s9 = sadd.s32 1, %s1704_s28  ;;  %s213_s10 = sadd.s32 1, %s1696_s26 }
   0x6   : > { %p34_p0 = scmp.ge.s32.totalorder %s32_s9, 2  ;;  %p223_p1 = scmp.ne.s32.totalorder %s1696_s26, %s1692_s25 }
   0x7   : > { %p224_p2 = scmp.eq.s32.totalorder %s1337_s30, 1  ;;  %p229_p3 = scmp.ne.s32.totalorder %s1692_s25, %s1688_s24 }
   0x8   : > { %s2079_s9 = smov (%p34_p0, %s32_s9), 0  ;;  %p230_p5 = scmp.eq.s32.totalorder %s1338_s8, 1 }
   0x9   : > { %p1803_p4 = por %p224_p2, %p223_p1  ;;  %s208_s12 = ssub.s32 %s1704_s28, %s2079_s9 }
   0xa   : > { %p1341_p6 = scmp.ge.s32.totalorder %s1708_s29, 1  ;;  %p211_p7 = scmp.eq.s32.totalorder %s208_s12, 0 }
   0xb   : > { %p1810_p8 = por %p230_p5, %p229_p3  ;;  %p293_p9 = scmp.lt.s32.totalorder %s1708_s29, 3 }
   0xc   : > { %s1816_s14 = scalar_select %p211_p7, %s1696_s26, %s213_s10  }
   0xd   : > { %p294_p10 = pnand %p1341_p6, %p293_p9 }
   0xe   : > { %p344_p11 = scmp.lt.s32.totalorder (!%p294_p10), %s1700_s27, 1  ;;  %v1710_v0 = vmov (!%p294_p10), 0   ;;  %s1711_s10 = smov (!%p294_p10), 2   ;;  %vm414_vm0 = vcmask (!%p294_p10), 15360   ;;  %v405_v28 = vld [vmem:[%s2064_s3] sm:$0xf] (!%p294_p10) }
   0xf   : > { %297 = sbr.rel (%p294_p10) target bundleno = 3155 (0xc53), region = 48  ;;  %1491 = vset.pattern.permute.xlu0 (!%p294_p10), %v1710_v0  ;;  %s1712_s12 = smov (!%p294_p10), 126   ;;  %v1713_v29 = vmov (!%p294_p10), 0.0   ;;  %vm429_vm1 = vcmask (!%p294_p10), 1039360   ;;  %vm440_vm2 = vcmask (!%p294_p10), 1031168   ;;  %vm443_vm3 = vcmask (!%p294_p10), 1043456  }
  0x10   : > { %523 = vmatprep.mubr.f32.mxu0 (!%p294_p10), %v1713_v29  ;;  %658 = vmatprep.mubr.f32.mxu1 (!%p294_p10), %v1713_v29  ;;  %s1714_s17 = smov (!%p294_p10), 127   ;;  %vm1715_vm4 = vmmov (!%p294_p10), 1   ;;  %v404_v48 = vld [vmem:[%s2063_s2] sm:$0xf] (!%p294_p10)  ;;  %vm451_vm6 = vcmask (!%p294_p10), 97280   ;;  %s1716_s30 = smov (!%p294_p10), 6  }
  0x11   : > { %vm1853_vm5 = vmpackc.low (!%p294_p10), %vm443_vm3, %vm1715_vm4  ;;  %vm693_vm7 = vcmask (!%p294_p10), 48128   ;;  %vm708_vm8 = vcmask (!%p294_p10), 1022976   ;;  %vm719_vm9 = vcmask (!%p294_p10), 998400   ;;  %vm972_vm10 = vcmask (!%p294_p10), 80896   ;;  %s1720_s23 = smov (!%p294_p10), 123   ;;  %s338_s20 = sand.u32 (!%p294_p10), 1, %s1692_s25  }
  0x12   : > { %vm987_vm11 = vcmask (!%p294_p10), 1006592   ;;  %vm998_vm12 = vcmask (!%p294_p10), 965632   ;;  %s1342_s21 = sshll.u32 (!%p294_p10), %s338_s20, 2 }
  0x16   : > { %s345_s15 = scalar_select %p344_p11, %s1700_s27, 1 }
  0x18   : > { %s1343_s16 = sshll.u32 %s345_s15, 2  ;;  %s1225_s15 = scalar_lea.sflag [#allocation3], %s338_s20 }
  0x19   : > { %s364_s19 = scalar_lea.vmem %s2067_s6, %s1343_s16  ;;  %s350_s22 = scalar_lea.vmem %s2061_s0, %s1343_s16 }
  0x1a   : > { %v367_v1 = vld [vmem:[%s364_s19] sm:$0xf]  ;;  %s360_s8 = scalar_lea.vmem %s2062_s1, %s1343_s16 }
  0x1b   : > { %370 = vperm.xlu0 %1491, %v367_v1   ;;  %v365_v2 = vld [vmem:[%s350_s22] sm:$0xf]  ;;  %s1719_s22 = smov 10  }
  0x1c   : > { %v366_v3 = vld [vmem:[%s360_s8] sm:$0xf]  ;;  %s1717_s8 = smov 125  }
  0x9a   : > { %v371_v4 = vpop.permute.xlu0 %370 }
  0x9b   : > { %v1829_v5 = vadd.f32 %v371_v4, %v365_v2  ;;  %v1831_v6 = vadd.f32 %v371_v4, %v366_v3 }
  0x9d   : > { %v1346_v7 = vmul.f32 -1.442695, %v1829_v5  ;;  %v1347_v8 = vmul.f32 -1.442695, %v1831_v6 }
  0x9f   : > { %1582 = vpow2.f32 %v1346_v7 }
  0xa0   : > { %1584 = vpow2.f32 %v1347_v8 }
  0xa9   : > { %v1583_v9 = vpop.eup %1582 }
  0xaa   : > { %v1585_v10 = vpop.eup %1584  ;;  %v396_v11 = vadd.f32 1.0, %v1583_v9 }
  0xab   : > { %v397_v12 = vadd.f32 1.0, %v1585_v10 }
  0xac   : > { %1586 = vrcp.f32 %v396_v11 }
  0xad   : > { %1588 = vrcp.f32 %v397_v12 }
  0xb6   : > { %v1587_v13 = vpop.eup %1586 }
  0xb7   : > { %v1589_v14 = vpop.eup %1588  ;;  %v402_v15 = vmul.f32 %v1587_v13, %v1829_v5 }
  0xb8   : > { %v403_v16 = vmul.f32 %v1589_v14, %v1831_v6  ;;  %v545_v14 = vld [vmem:[%s2066_s5] sm:$0xf] }
  0xb9   : > { %v406_v17 = vmul.f32 0.0, %v402_v15 }
  0xbb   : > { %v1492_v18 = vpack.i.bf16 %v403_v16, %v406_v17 }
  0xbd   : > { %1493 = vrot.lane.b32.xlu0 %v1492_v18, %s1711_s10 }
 0x12f   : > { %v1494_v19 = vpop.permute.xlu0 %1493 }
 0x130   : > { %v1496_v20 = vunpack.i.h.bf16 %v1494_v19  ;;  %v1495_v21 = vunpack.i.l.bf16 %v1494_v19 }
 0x132   : > { %v415_v22 = vsel %vm414_vm0, %v1495_v21, %v1496_v20  ;;  %v422_v23 = vrot.slane %v1496_v20, 4  ;;  %v418_v27 = vsel %vm414_vm0, 0.0, %v1495_v21 }
 0x133   : > { %v1497_v24 = vpack.i.bf16 %v1496_v20, %v415_v22  ;;  %v421_v25 = vrot.slane %v415_v22, 4  ;;  %v420_v30 = vrot.slane %v418_v27, 4 }
 0x135   : > { %1498 = vrot.lane.b32.xlu0 %v1497_v24, %s1712_s12  ;;  %v1502_v26 = vpack.i.bf16 %v422_v23, %v421_v25 }
 0x137   : > { %1503 = vrot.lane.b32.xlu1 %v1502_v26, %s1714_s17 }
 0x139   : > { %448 = vperm.xlu0 %1491, %v405_v28  }
 0x13b   : > { %423 = vrot.lane.b32.xlu1 %v420_v30, %s1714_s17 }
 0x13f   : > { %434 = vrot.lane.b32.xlu1 %v418_v27, %s1712_s12 }
 0x1a7   : > { %v1499_v31 = vpop.permute.xlu0 %1498 }
 0x1a8   : > { %v1501_v32 = vunpack.i.h.bf16 %v1499_v31  ;;  %v1500_v33 = vunpack.i.l.bf16 %v1499_v31 }
 0x1a9   : > { %v1504_v34 = vpop.permute.xlu1 %1503 }
 0x1aa   : > { %v1506_v35 = vunpack.i.h.bf16 %v1504_v34  ;;  %v1505_v36 = vunpack.i.l.bf16 %v1504_v34  ;;  %v442_v39 = vsel %vm440_vm2, %v1500_v33, %v1501_v32  ;;  %v544_v32 = vld [vmem:[%s2065_s4] sm:$0xf] }
 0x1ac   : > { %v431_v37 = vsel %vm429_vm1, %v1505_v36, %v1506_v35 }
 0x1ad   : > { %v424_v38 = vpop.permute.xlu1 %423  ;;  %v445_v40 = vsel %vm443_vm3, %v415_v22, %v431_v37 }
 0x1ae   : > { %v1388_v42 = vpack.c.bf16 %v442_v39, %v445_v40  ;;  %v430_v43 = vsel %vm429_vm1, %v424_v38, %v1505_v36 }
 0x1af   : > { %v444_v46 = vsel %vm443_vm3, %v418_v27, %v430_v43 }
 0x1b0   : > { %1390 = vmatprep.subr.msk.bf16.mxu0 %vm1853_vm5, %v1388_v42 }
 0x1b1   : > { %v435_v44 = vpop.permute.xlu1 %434 }
 0x1b2   : > { %v441_v45 = vsel %vm440_vm2, %v435_v44, %v1500_v33 }
 0x1b3   : > { %v1391_v47 = vpack.c.bf16 %v441_v45, %v444_v46 }
 0x1b5   : > { %1393 = vmatpush1.bf16.msk.msra.mxu0 %vm1853_vm5, %v1391_v47 }
 0x1b8   : > { %1350 = vmatmul.mubr.msk.f32.vlgmr.msra.gmra.mrb[0].mxu0 %vm451_vm6, %v404_v48  ;;  %v449_v49 = vpop.permute.xlu0 %448 }
 0x1b9   : > { %800 = vmatprep.mubr.f32.mxu0 %v1713_v29 }
 0x28b   : > { %v525_v50 = vpop.f32.mrb[0].mxu0 }
 0x28c   : > { %v526_v51 = vadd.f32 %v525_v50, %v449_v49  ;;  %v527_v52 = vpop.f32.mrb[1].mxu0 }
 0x28d   : > { %v528_v53 = vadd.f32 %v527_v52, %v449_v49 }
 0x28e   : > { %v1351_v54 = vmul.f32 -1.442695, %v526_v51 }
 0x28f   : > { %v1352_v55 = vmul.f32 -1.442695, %v528_v53 }
 0x290   : > { %1590 = vpow2.f32 %v1351_v54 }
 0x291   : > { %1592 = vpow2.f32 %v1352_v55 }
 0x29a   : > { %v1591_v56 = vpop.eup %1590 }
 0x29b   : > { %v1593_v57 = vpop.eup %1592  ;;  %v536_v58 = vadd.f32 1.0, %v1591_v56 }
 0x29c   : > { %v537_v59 = vadd.f32 1.0, %v1593_v57 }
 0x29d   : > { %1594 = vrcp.f32 %v536_v58 }
 0x29e   : > { %1596 = vrcp.f32 %v537_v59 }
 0x2a7   : > { %v1595_v60 = vpop.eup %1594 }
 0x2a8   : > { %v1597_v61 = vpop.eup %1596  ;;  %v542_v62 = vmul.f32 %v1595_v60, %v526_v51 }
 0x2a9   : > { %v543_v63 = vmul.f32 %v1597_v61, %v528_v53  ;;  %v1359_v61 = vld [vmem:[%s2064_s3 + $0x4] sm:$0xf] }
 0x2aa   : > { %v546_v0 = vmul.f32 0.0, %v542_v62 }
 0x2ac   : > { %v1507_v1 = vpack.i.bf16 %v543_v63, %v546_v0 }
 0x2ae   : > { %1508 = vrot.lane.b32.xlu1 %v1507_v1, %s1711_s10  ;;  %s1718_s10 = smov 122  }
 0x320   : > { %v1509_v2 = vpop.permute.xlu1 %1508 }
 0x321   : > { %v1511_v3 = vunpack.i.h.bf16 %v1509_v2  ;;  %v1510_v4 = vunpack.i.l.bf16 %v1509_v2 }
 0x323   : > { %v554_v7 = vsel %vm414_vm0, %v1510_v4, %v1511_v3  ;;  %v557_v8 = vsel %vm414_vm0, 0.0, %v1510_v4  ;;  %v561_v9 = vrot.slane %v1511_v3, 4 }
 0x324   : > { %v559_v10 = vrot.slane %v557_v8, 4  ;;  %v560_v11 = vrot.slane %v554_v7, 4  ;;  %v1517_v13 = vpack.i.bf16 %v1511_v3, %v554_v7 }
 0x326   : > { %562 = vrot.lane.b32.xlu1 %v559_v10, %s1714_s17  ;;  %v1512_v12 = vpack.i.bf16 %v561_v9, %v560_v11 }
 0x328   : > { %1513 = vrot.lane.b32.xlu0 %v1512_v12, %s1714_s17 }
 0x32a   : > { %572 = vrot.lane.b32.xlu1 %v557_v8, %s1712_s12 }
 0x32c   : > { %1518 = vrot.lane.b32.xlu0 %v1517_v13, %s1712_s12 }
 0x330   : > { %584 = vperm.xlu0 %1491, %v545_v14  }
 0x398   : > { %v563_v15 = vpop.permute.xlu1 %562 }
 0x39a   : > { %v1514_v16 = vpop.permute.xlu0 %1513 }
 0x39b   : > { %v1516_v17 = vunpack.i.h.bf16 %v1514_v16  ;;  %v1515_v18 = vunpack.i.l.bf16 %v1514_v16  ;;  %v1358_v16 = vld [vmem:[%s2063_s2 + $0x4] sm:$0xf] }
 0x39c   : > { %v573_v24 = vpop.permute.xlu1 %572 }
 0x39d   : > { %v568_v19 = vsel %vm429_vm1, %v563_v15, %v1515_v18  ;;  %v569_v21 = vsel %vm429_vm1, %v1515_v18, %v1516_v17 }
 0x39e   : > { %v1519_v20 = vpop.permute.xlu0 %1518  ;;  %v581_v26 = vsel %vm443_vm3, %v554_v7, %v569_v21  ;;  %v580_v28 = vsel %vm443_vm3, %v557_v8, %v568_v19 }
 0x39f   : > { %v1521_v22 = vunpack.i.h.bf16 %v1519_v20  ;;  %v1520_v23 = vunpack.i.l.bf16 %v1519_v20 }
 0x3a1   : > { %v579_v25 = vsel %vm440_vm2, %v1520_v23, %v1521_v22  ;;  %v578_v27 = vsel %vm440_vm2, %v573_v24, %v1520_v23 }
 0x3a2   : > { %v1394_v30 = vpack.c.bf16 %v579_v25, %v581_v26  ;;  %v1397_v31 = vpack.c.bf16 %v578_v27, %v580_v28 }
 0x3a4   : > { %1396 = vmatprep.subr.msk.bf16.mxu1 %vm1853_vm5, %v1394_v30 }
 0x3a5   : > { %1399 = vmatpush1.bf16.msk.msra.mxu1 %vm1853_vm5, %v1397_v31 }
 0x3a8   : > { %1355 = vmatmul.mubr.msk.f32.vlgmr.msra.gmra.mrb[0].mxu1 %vm451_vm6, %v544_v32 }
 0x3a9   : > { %937 = vmatprep.mubr.f32.mxu1 %v1713_v29 }
 0x3af   : > { %v585_v33 = vpop.permute.xlu0 %584 }
 0x47b   : > { %v660_v34 = vpop.f32.mrb[0].mxu1 }
 0x47c   : > { %v661_v35 = vadd.f32 %v660_v34, %v585_v33  ;;  %v662_v36 = vpop.f32.mrb[1].mxu1 }
 0x47d   : > { %v663_v37 = vadd.f32 %v662_v36, %v585_v33 }
 0x47e   : > { %v1895_v38 = vadd.f32 %v661_v35, %v1829_v5 }
 0x47f   : > { %v1898_v39 = vadd.f32 %v663_v37, %v1831_v6 }
 0x480   : > { %v1356_v40 = vmul.f32 -1.442695, %v1895_v38 }
 0x481   : > { %v1357_v42 = vmul.f32 -1.442695, %v1898_v39 }
 0x482   : > { %1598 = vpow2.f32 %v1356_v40 }
 0x483   : > { %1600 = vpow2.f32 %v1357_v42 }
 0x48c   : > { %v1599_v43 = vpop.eup %1598 }
 0x48d   : > { %v1601_v44 = vpop.eup %1600  ;;  %v673_v45 = vadd.f32 1.0, %v1599_v43 }
 0x48e   : > { %v674_v46 = vadd.f32 1.0, %v1601_v44 }
 0x48f   : > { %1602 = vrcp.f32 %v673_v45 }
 0x490   : > { %1604 = vrcp.f32 %v674_v46 }
 0x499   : > { %v1603_v47 = vpop.eup %1602 }
 0x49a   : > { %v1605_v48 = vpop.eup %1604  ;;  %v679_v5 = vmul.f32 %v1603_v47, %v1895_v38 }
 0x49b   : > { %v680_v49 = vmul.f32 %v1605_v48, %v1898_v39  ;;  %v1366_v48 = vld [vmem:[%s2066_s5 + $0x4] sm:$0xf] }
 0x49c   : > { %v685_v6 = vmul.f32 0.0, %v679_v5 }
 0x49e   : > { %v1522_v50 = vpack.i.bf16 %v680_v49, %v685_v6 }
 0x4a0   : > { %1523 = vrot.lane.b32.xlu1 %v1522_v50, %s1716_s30 }
 0x512   : > { %v1524_v51 = vpop.permute.xlu1 %1523 }
 0x513   : > { %v1526_v52 = vunpack.i.h.bf16 %v1524_v51  ;;  %v1525_v53 = vunpack.i.l.bf16 %v1524_v51 }
 0x515   : > { %v694_v54 = vsel %vm693_vm7, %v1525_v53, %v1526_v52  ;;  %v697_v55 = vsel %vm693_vm7, 0.0, %v1525_v53  ;;  %v701_v56 = vrot.slane %v1526_v52, 4 }
 0x516   : > { %v699_v57 = vrot.slane %v697_v55, 4  ;;  %v700_v58 = vrot.slane %v694_v54, 4  ;;  %v1532_v60 = vpack.i.bf16 %v1526_v52, %v694_v54 }
 0x518   : > { %702 = vrot.lane.b32.xlu1 %v699_v57, %s1717_s8  ;;  %v1527_v59 = vpack.i.bf16 %v701_v56, %v700_v58 }
 0x51a   : > { %1528 = vrot.lane.b32.xlu0 %v1527_v59, %s1717_s8 }
 0x51c   : > { %713 = vrot.lane.b32.xlu1 %v697_v55, %s1718_s10 }
 0x51e   : > { %1533 = vrot.lane.b32.xlu0 %v1532_v60, %s1718_s10 }
 0x522   : > { %726 = vperm.xlu0 %1491, %v1359_v61  }
 0x58a   : > { %v703_v62 = vpop.permute.xlu1 %702 }
 0x58c   : > { %v1529_v63 = vpop.permute.xlu0 %1528 }
 0x58d   : > { %v1531_v0 = vunpack.i.h.bf16 %v1529_v63  ;;  %v1530_v1 = vunpack.i.l.bf16 %v1529_v63  ;;  %v1365_v63 = vld [vmem:[%s2065_s4 + $0x4] sm:$0xf] }
 0x58e   : > { %v714_v9 = vpop.permute.xlu1 %713 }
 0x58f   : > { %v709_v2 = vsel %vm708_vm8, %v703_v62, %v1530_v1  ;;  %v710_v3 = vsel %vm708_vm8, %v1530_v1, %v1531_v0 }
 0x590   : > { %v1534_v4 = vpop.permute.xlu0 %1533  ;;  %v722_v12 = vsel %vm443_vm3, %v697_v55, %v709_v2  ;;  %v723_v13 = vsel %vm443_vm3, %v694_v54, %v710_v3 }
 0x591   : > { %v1536_v7 = vunpack.i.h.bf16 %v1534_v4  ;;  %v1535_v8 = vunpack.i.l.bf16 %v1534_v4 }
 0x593   : > { %v720_v10 = vsel %vm719_vm9, %v714_v9, %v1535_v8  ;;  %v721_v11 = vsel %vm719_vm9, %v1535_v8, %v1536_v7 }
 0x594   : > { %v1400_v14 = vpack.c.bf16 %v721_v11, %v723_v13  ;;  %v1403_v15 = vpack.c.bf16 %v720_v10, %v722_v12 }
 0x596   : > { %1402 = vmatprep.subr.msk.bf16.mxu0 %vm1853_vm5, %v1400_v14 }
 0x597   : > { %1405 = vmatpush1.bf16.msk.msra.mxu0 %vm1853_vm5, %v1403_v15 }
 0x59a   : > { %1362 = vmatmul.mubr.msk.f32.vlgmr.msra.gmra.mrb[2].mxu0 %vm451_vm6, %v1358_v16 }
 0x59b   : > { %1079 = vmatprep.mubr.f32.mxu0 %v1713_v29 }
 0x5a1   : > { %v727_v17 = vpop.permute.xlu0 %726 }
 0x66d   : > { %v802_v18 = vpop.f32.mrb[2].mxu0 }
 0x66e   : > { %v803_v19 = vadd.f32 %v802_v18, %v727_v17  ;;  %v804_v20 = vpop.f32.mrb[3].mxu0 }
 0x66f   : > { %v805_v21 = vadd.f32 %v804_v20, %v727_v17 }
 0x670   : > { %v1363_v22 = vmul.f32 -1.442695, %v803_v19 }
 0x671   : > { %v1364_v23 = vmul.f32 -1.442695, %v805_v21 }
 0x672   : > { %1606 = vpow2.f32 %v1363_v22 }
 0x673   : > { %1608 = vpow2.f32 %v1364_v23 }
 0x67c   : > { %v1607_v24 = vpop.eup %1606 }
 0x67d   : > { %v1609_v25 = vpop.eup %1608  ;;  %v813_v26 = vadd.f32 1.0, %v1607_v24 }
 0x67e   : > { %v814_v27 = vadd.f32 1.0, %v1609_v25 }
 0x67f   : > { %1610 = vrcp.f32 %v813_v26 }
 0x680   : > { %1612 = vrcp.f32 %v814_v27 }
 0x689   : > { %v1611_v28 = vpop.eup %1610 }
 0x68a   : > { %v1613_v30 = vpop.eup %1612  ;;  %v819_v31 = vmul.f32 %v1611_v28, %v803_v19  ;;  %v1373_v28 = vld [vmem:[%s2064_s3 + $0x8] sm:$0xf] }
 0x68b   : > { %v820_v32 = vmul.f32 %v1613_v30, %v805_v21 }
 0x68c   : > { %v825_v33 = vmul.f32 0.0, %v819_v31 }
 0x68e   : > { %v1537_v34 = vpack.i.bf16 %v820_v32, %v825_v33 }
 0x690   : > { %1538 = vrot.lane.b32.xlu1 %v1537_v34, %s1716_s30  ;;  %s1721_s30 = smov 118  }
 0x702   : > { %v1539_v35 = vpop.permute.xlu1 %1538 }
 0x703   : > { %v1541_v36 = vunpack.i.h.bf16 %v1539_v35  ;;  %v1540_v37 = vunpack.i.l.bf16 %v1539_v35 }
 0x705   : > { %v833_v40 = vsel %vm693_vm7, %v1540_v37, %v1541_v36  ;;  %v836_v42 = vsel %vm693_vm7, 0.0, %v1540_v37  ;;  %v840_v43 = vrot.slane %v1541_v36, 4 }
 0x706   : > { %v838_v44 = vrot.slane %v836_v42, 4  ;;  %v839_v45 = vrot.slane %v833_v40, 4  ;;  %v1547_v47 = vpack.i.bf16 %v1541_v36, %v833_v40 }
 0x708   : > { %841 = vrot.lane.b32.xlu1 %v838_v44, %s1717_s8  ;;  %v1542_v46 = vpack.i.bf16 %v840_v43, %v839_v45 }
 0x70a   : > { %1543 = vrot.lane.b32.xlu0 %v1542_v46, %s1717_s8 }
 0x70c   : > { %851 = vrot.lane.b32.xlu1 %v836_v42, %s1718_s10 }
 0x70e   : > { %1548 = vrot.lane.b32.xlu0 %v1547_v47, %s1718_s10 }
 0x712   : > { %863 = vperm.xlu0 %1491, %v1366_v48  }
 0x77a   : > { %v842_v5 = vpop.permute.xlu1 %841 }
 0x77c   : > { %v1544_v49 = vpop.permute.xlu0 %1543 }
 0x77d   : > { %v1546_v6 = vunpack.i.h.bf16 %v1544_v49  ;;  %v1545_v50 = vunpack.i.l.bf16 %v1544_v49 }
 0x77e   : > { %v852_v56 = vpop.permute.xlu1 %851 }
 0x77f   : > { %v847_v51 = vsel %vm708_vm8, %v842_v5, %v1545_v50  ;;  %v848_v52 = vsel %vm708_vm8, %v1545_v50, %v1546_v6  ;;  %v1372_v5 = vld [vmem:[%s2063_s2 + $0x8] sm:$0xf] }
 0x780   : > { %v1549_v53 = vpop.permute.xlu0 %1548  ;;  %v859_v59 = vsel %vm443_vm3, %v836_v42, %v847_v51  ;;  %v860_v60 = vsel %vm443_vm3, %v833_v40, %v848_v52 }
 0x781   : > { %v1551_v54 = vunpack.i.h.bf16 %v1549_v53  ;;  %v1550_v55 = vunpack.i.l.bf16 %v1549_v53 }
 0x783   : > { %v857_v57 = vsel %vm719_vm9, %v852_v56, %v1550_v55  ;;  %v858_v58 = vsel %vm719_vm9, %v1550_v55, %v1551_v54 }
 0x784   : > { %v1406_v61 = vpack.c.bf16 %v858_v58, %v860_v60  ;;  %v1409_v62 = vpack.c.bf16 %v857_v57, %v859_v59 }
 0x786   : > { %1408 = vmatprep.subr.msk.bf16.mxu1 %vm1853_vm5, %v1406_v61 }
 0x787   : > { %1411 = vmatpush1.bf16.msk.msra.mxu1 %vm1853_vm5, %v1409_v62 }
 0x78a   : > { %1369 = vmatmul.mubr.msk.f32.vlgmr.msra.gmra.mrb[2].mxu1 %vm451_vm6, %v1365_v63 }
 0x78b   : > { %1216 = vmatprep.mubr.f32.mxu1 %v1713_v29 }
 0x791   : > { %v864_v0 = vpop.permute.xlu0 %863 }
 0x85d   : > { %v939_v1 = vpop.f32.mrb[2].mxu1 }
 0x85e   : > { %v940_v2 = vadd.f32 %v939_v1, %v864_v0  ;;  %v941_v3 = vpop.f32.mrb[3].mxu1 }
 0x85f   : > { %v942_v4 = vadd.f32 %v941_v3, %v864_v0 }
 0x860   : > { %v944_v7 = vadd.f32 %v940_v2, %v1895_v38 }
 0x861   : > { %v1956_v8 = vadd.f32 %v942_v4, %v1898_v39 }
 0x862   : > { %v1370_v9 = vmul.f32 -1.442695, %v944_v7 }
 0x863   : > { %v1371_v10 = vmul.f32 -1.442695, %v1956_v8 }
 0x864   : > { %1614 = vpow2.f32 %v1370_v9 }
 0x865   : > { %1616 = vpow2.f32 %v1371_v10 }
 0x86e   : > { %v1615_v11 = vpop.eup %1614 }
 0x86f   : > { %v1617_v12 = vpop.eup %1616  ;;  %v952_v13 = vadd.f32 1.0, %v1615_v11 }
 0x870   : > { %v953_v14 = vadd.f32 1.0, %v1617_v12 }
 0x871   : > { %1618 = vrcp.f32 %v952_v13 }
 0x872   : > { %1620 = vrcp.f32 %v953_v14  ;;  %v1380_v14 = vld [vmem:[%s2066_s5 + $0x8] sm:$0xf] }
 0x87b   : > { %v1619_v29 = vpop.eup %1618 }
 0x87c   : > { %v1621_v15 = vpop.eup %1620  ;;  %v958_v16 = vmul.f32 %v1619_v29, %v944_v7 }
 0x87d   : > { %v959_v17 = vmul.f32 %v1621_v15, %v1956_v8 }
 0x87e   : > { %v964_v38 = vmul.f32 0.0, %v958_v16 }
 0x880   : > { %v1552_v18 = vpack.i.bf16 %v959_v17, %v964_v38 }
 0x882   : > { %1553 = vrot.lane.b32.xlu1 %v1552_v18, %s1719_s22 }
 0x8f4   : > { %v1554_v39 = vpop.permute.xlu1 %1553 }
 0x8f5   : > { %v1556_v19 = vunpack.i.h.bf16 %v1554_v39  ;;  %v1555_v20 = vunpack.i.l.bf16 %v1554_v39 }
 0x8f7   : > { %v973_v21 = vsel %vm972_vm10, %v1555_v20, %v1556_v19  ;;  %v976_v22 = vsel %vm972_vm10, 0.0, %v1555_v20  ;;  %v980_v23 = vrot.slane %v1556_v19, 4 }
 0x8f8   : > { %v978_v24 = vrot.slane %v976_v22, 4  ;;  %v979_v25 = vrot.slane %v973_v21, 4  ;;  %v1562_v27 = vpack.i.bf16 %v1556_v19, %v973_v21 }
 0x8fa   : > { %981 = vrot.lane.b32.xlu1 %v978_v24, %s1720_s23  ;;  %v1557_v26 = vpack.i.bf16 %v980_v23, %v979_v25 }
 0x8fc   : > { %1558 = vrot.lane.b32.xlu0 %v1557_v26, %s1720_s23 }
 0x8fe   : > { %992 = vrot.lane.b32.xlu1 %v976_v22, %s1721_s30 }
 0x900   : > { %1563 = vrot.lane.b32.xlu0 %v1562_v27, %s1721_s30 }
 0x904   : > { %1005 = vperm.xlu0 %1491, %v1373_v28   ;;  %v1379_v28 = vld [vmem:[%s2065_s4 + $0x8] sm:$0xf] }
 0x96c   : > { %v982_v30 = vpop.permute.xlu1 %981 }
 0x96e   : > { %v1559_v31 = vpop.permute.xlu0 %1558 }
 0x96f   : > { %v1561_v32 = vunpack.i.h.bf16 %v1559_v31  ;;  %v1560_v33 = vunpack.i.l.bf16 %v1559_v31 }
 0x970   : > { %v993_v42 = vpop.permute.xlu1 %992 }
 0x971   : > { %v988_v34 = vsel %vm987_vm11, %v982_v30, %v1560_v33  ;;  %v989_v35 = vsel %vm987_vm11, %v1560_v33, %v1561_v32 }
 0x972   : > { %v1564_v36 = vpop.permute.xlu0 %1563  ;;  %v1001_v45 = vsel %vm443_vm3, %v976_v22, %v988_v34  ;;  %v1002_v46 = vsel %vm443_vm3, %v973_v21, %v989_v35 }
 0x973   : > { %v1566_v37 = vunpack.i.h.bf16 %v1564_v36  ;;  %v1565_v40 = vunpack.i.l.bf16 %v1564_v36 }
 0x975   : > { %v999_v43 = vsel %vm998_vm12, %v993_v42, %v1565_v40  ;;  %v1000_v44 = vsel %vm998_vm12, %v1565_v40, %v1566_v37 }
 0x976   : > { %v1412_v47 = vpack.c.bf16 %v1000_v44, %v1002_v46  ;;  %v1415_v48 = vpack.c.bf16 %v999_v43, %v1001_v45 }
 0x978   : > { %1414 = vmatprep.subr.msk.bf16.mxu0 %vm1853_vm5, %v1412_v47 }
 0x979   : > { %1417 = vmatpush1.bf16.msk.msra.mxu0 %vm1853_vm5, %v1415_v48 }
 0x97c   : > { %1376 = vmatmul.mubr.msk.f32.vlgmr.msra.gmra.mrb[4].mxu0 %vm451_vm6, %v1372_v5 }
 0x983   : > { %v1006_v49 = vpop.permute.xlu0 %1005 }
 0xa4f   : > { %v1081_v6 = vpop.f32.mrb[4].mxu0 }
 0xa50   : > { %v1082_v50 = vadd.f32 %v1081_v6, %v1006_v49  ;;  %v1083_v51 = vpop.f32.mrb[5].mxu0 }
 0xa51   : > { %v1084_v52 = vadd.f32 %v1083_v51, %v1006_v49 }
 0xa52   : > { %v1377_v53 = vmul.f32 -1.442695, %v1082_v50 }
 0xa53   : > { %v1378_v54 = vmul.f32 -1.442695, %v1084_v52 }
 0xa54   : > { %1622 = vpow2.f32 %v1377_v53 }
 0xa55   : > { %1624 = vpow2.f32 %v1378_v54 }
 0xa5e   : > { %v1623_v55 = vpop.eup %1622 }
 0xa5f   : > { %v1625_v56 = vpop.eup %1624  ;;  %v1092_v57 = vadd.f32 1.0, %v1623_v55 }
 0xa60   : > { %v1093_v58 = vadd.f32 1.0, %v1625_v56 }
 0xa61   : > { %1626 = vrcp.f32 %v1092_v57 }
 0xa62   : > { %1628 = vrcp.f32 %v1093_v58 }
 0xa6b   : > { %v1627_v59 = vpop.eup %1626 }
 0xa6c   : > { %v1629_v60 = vpop.eup %1628  ;;  %v1098_v61 = vmul.f32 %v1627_v59, %v1082_v50 }
 0xa6d   : > { %v1099_v62 = vmul.f32 %v1629_v60, %v1084_v52 }
 0xa6e   : > { %v1104_v63 = vmul.f32 0.0, %v1098_v61 }
 0xa70   : > { %v1567_v0 = vpack.i.bf16 %v1099_v62, %v1104_v63 }
 0xa72   : > { %1568 = vrot.lane.b32.xlu1 %v1567_v0, %s1719_s22  ;;  %s1385_s22 = sshll.u32 %s1700_s27, 6  ;;  %s1722_s27 = smov [#allocation2]  }
 0xa73   : > { %s2014_s12 = scalar_lea.hbm %s2068_s7, %s1385_s22  ;;  %s1634_s17 = sshll.u32 %s1722_s27, 4  ;;  %s1635_s17 = int_to_ptr.vmem [resolvable:$false] %s1634_s17 }
 0xa74   : > { %s1636_s18 = scalar_lea.vmem %s1635_s17, 128 }
 0xae4   : > { %v1569_v1 = vpop.permute.xlu1 %1568 }
 0xae5   : > { %v1571_v2 = vunpack.i.h.bf16 %v1569_v1  ;;  %v1570_v3 = vunpack.i.l.bf16 %v1569_v1 }
 0xae7   : > { %v1112_v4 = vsel %vm972_vm10, %v1570_v3, %v1571_v2  ;;  %v1115_v7 = vsel %vm972_vm10, 0.0, %v1570_v3  ;;  %v1119_v9 = vrot.slane %v1571_v2, 4 }
 0xae8   : > { %v1117_v10 = vrot.slane %v1115_v7, 4  ;;  %v1118_v11 = vrot.slane %v1112_v4, 4  ;;  %v1577_v13 = vpack.i.bf16 %v1571_v2, %v1112_v4 }
 0xaea   : > { %1120 = vrot.lane.b32.xlu1 %v1117_v10, %s1720_s23  ;;  %v1572_v12 = vpack.i.bf16 %v1119_v9, %v1118_v11 }
 0xaec   : > { %1573 = vrot.lane.b32.xlu0 %v1572_v12, %s1720_s23  ;;  %s340_s23 = scalar_lea.vmem [#allocation2], %s1342_s21 }
 0xaee   : > { %1130 = vrot.lane.b32.xlu1 %v1115_v7, %s1721_s30 }
 0xaf0   : > { %1578 = vrot.lane.b32.xlu0 %v1577_v13, %s1721_s30  ;;  %s1239_s30 = sshll.u32 %s340_s23, 4  ;;  %s2016_s30 = int_to_ptr.vmem [resolvable:$true] %s1239_s30 }
 0xaf1   : > { %s1630_s16 = scalar_lea.vmem %s2016_s30, 64  ;;  %p1637_p1 = scmp.lt.s32.totalorder %s2016_s30, %s1635_s17 }
 0xaf2   : > { %p1631_p12 = scmp.ne.s32.totalorder %s2016_s30, %s1630_s16  ;;  %p1638_p2 = scmp.lt.s32.totalorder %s1636_s18, %s1630_s16 }
 0xaf4   : > { %1142 = vperm.xlu0 %1491, %v1380_v14   ;;  %p1632_p13 = pnand %p1631_p12, %p1803_p4  ;;  %p1639_p3 = por %p1638_p2, %p1637_p1 }
 0xaf6   : > { %p1633_p0 = pneg %p1632_p13 }
 0xaf8   : > { %p1640_p5 = pnand %p1639_p3, %p1633_p0 }
 0xb5c   : > { %v1121_v29 = vpop.permute.xlu1 %1120 }
 0xb5e   : > { %v1574_v15 = vpop.permute.xlu0 %1573 }
 0xb5f   : > { %v1576_v16 = vunpack.i.h.bf16 %v1574_v15  ;;  %v1575_v17 = vunpack.i.l.bf16 %v1574_v15 }
 0xb60   : > { %v1131_v21 = vpop.permute.xlu1 %1130 }
 0xb61   : > { %v1126_v38 = vsel %vm987_vm11, %v1121_v29, %v1575_v17  ;;  %v1127_v18 = vsel %vm987_vm11, %v1575_v17, %v1576_v16 }
 0xb62   : > { %v1579_v39 = vpop.permute.xlu0 %1578  ;;  %v1138_v24 = vsel %vm443_vm3, %v1115_v7, %v1126_v38  ;;  %v1139_v25 = vsel %vm443_vm3, %v1112_v4, %v1127_v18 }
 0xb63   : > { %v1581_v19 = vunpack.i.h.bf16 %v1579_v39  ;;  %v1580_v20 = vunpack.i.l.bf16 %v1579_v39 }
 0xb65   : > { %v1136_v22 = vsel %vm998_vm12, %v1131_v21, %v1580_v20  ;;  %v1137_v23 = vsel %vm998_vm12, %v1580_v20, %v1581_v19 }
 0xb66   : > { %v1418_v26 = vpack.c.bf16 %v1137_v23, %v1139_v25  ;;  %v1421_v27 = vpack.c.bf16 %v1136_v22, %v1138_v24 }
 0xb68   : > { %1420 = vmatprep.subr.msk.bf16.mxu1 %vm1853_vm5, %v1418_v26 }
 0xb69   : > { %1423 = vmatpush1.bf16.msk.msra.mxu1 %vm1853_vm5, %v1421_v27 }
 0xb6c   : > { %1383 = vmatmul.mubr.msk.f32.vlgmr.msra.gmra.mrb[4].mxu1 %vm451_vm6, %v1379_v28 }
 0xb73   : > { %v1143_v31 = vpop.permute.xlu0 %1142 }
 0xc3f   : > { %v1218_v30 = vpop.f32.mrb[4].mxu1 }
 0xc40   : > { %v1219_v32 = vpop.f32.mrb[5].mxu1 }
 0xc41   : > { %v1220_v33 = vadd.f32 %v1219_v32, %v1143_v31 }
 0xc43   : > { %v1222_v34 = vadd.f32 %v1220_v33, %v1956_v8 }
 0xc45   : > { %1223 = vst [vmem:[%s340_s23] sm:$0xf] %v1222_v34 }
 0xc46   : > { %1643 = shalt.err (!%p1640_p5)
}
 0xc47   : > { %s1644_s19 = scalar_lea.hbm %s2014_s12, 64  ;;  %s1648_s22 = scalar_lea.hbm %s2068_s7, 128 }
 0xc48   : > { %p1645_p6 = scmp.ne.s32.totalorder %s2014_s12, %s1644_s19  ;;  %p1649_p10 = scmp.lt.u32.totalorder %s2014_s12, %s2068_s7 }
 0xc49   : > { %p1650_p11 = scmp.lt.u32.totalorder %s1648_s22, %s1644_s19  ;;  %p1652_p13 = scmp.lt.u32.totalorder %s1644_s19, %s2014_s12 }
 0xc4a   : > { %p1646_p7 = pnand %p1645_p6, %p1803_p4 }
 0xc4b   : > { %p1651_p12 = por %p1650_p11, %p1649_p10 }
 0xc4c   : > { %p1647_p9 = pneg %p1646_p7 }
 0xc4d   : > { %p1653_p0 = por %p1652_p13, %p1651_p12 }
 0xc4f   : > { %p1654_p1 = pnand %p1653_p0, %p1647_p9 }
 0xc51   : > { %1657 = shalt.err (!%p1654_p1)
}
 0xc52   : > { %1424 = dma.vmem_to_hbm [thread:$0]  (%p1803_p4), %s2016_s30, 64, %s2014_s12, %s1225_s15  }
 0xc53 PF: > { %p1430_p2 = scmp.ge.s32.totalorder %s1708_s29, 2  ;;  %s1251_s10 = sand.u32 1, %s1688_s24  }
 0xc54   : > { %s1252_s16 = scalar_lea.sflag [#allocation3], %s1251_s10 }
 0xc55   : > { %p1427_p3 = pnand %p1430_p2, %p1810_p8 }
 0xc57   : > { %1683 = dma.done.wait (!%p1427_p3), %s1252_s16, 64  }
 0xc58   : > { %1685 = vsyncadd (!%p1427_p3), %s1252_s16, 4294967232  ;;  %s20_s29 = sadd.s32 1, %s1708_s29   ;;  %s2073_s24 = smov %s1692_s25 }
 0xc59   : > { %p17_p5 = scmp.ge.s32.totalorder %s20_s29, 4   ;;  %s2074_s25 = smov %s1696_s26 }
 0xc5a   : > { %s2075_s26 = smov %s1816_s14  ;;  %s2076_s27 = smov %s1704_s28 }
 0xc5b   : > { %s2077_s28 = smov %s2079_s9  ;;  %19 = sbr.rel (!%p17_p5) target bundleno = 4 (0x4), region = 97 }
 0xc62   :  { %1257 = vsyncpa [#allocation3], 1 }
 0xc63   :  { %1259 = vsyncpa [#allocation3 + $0x1], 1 }

</bundles_post_ra>
